<compile_context>
chip_gen: v7x
topology: tpu7x:2x2x1
jax: 0.10.0
libtpu: 0.0.40
codegen_flags: <defaults>
</compile_context>

<pallas_src>
import functools

import jax
import jax.numpy as jnp
from jax.experimental import pallas as pl
from jax.experimental.pallas import tpu as pltpu


def _ggnn_kernel(n_steps, state_dim, anno_dim,
                 prop0_ref, a_ref, at_ref,
                 w_io_ref, w_rz_ref, w_t_ref, w_o1_ref, w_o2_ref, b_ref,
                 out_ref):
    """One block of Bb batch elements (stacked as Bb*N rows) per grid step."""
    D, Da = state_dim, anno_dim

    def dot(x, w):
        return jnp.dot(x, w, preferred_element_type=jnp.float32)

    rows = prop0_ref.shape[1]          # Bb * N (static)

    s = prop0_ref[0]                   # (rows, D)   initial prop_state
    anno = s[:, :Da]                   # annotations live in the first Da lanes
    A = a_ref[0]                       # (rows, rows) block-diagonal A_in
    AT = at_ref[0]                     # (rows, rows) block-diagonal A_out

    # Hoist weight loads / bias broadcasts out of the unrolled step loop.
    W_io = w_io_ref[...]               # (D,   2D)  [W_in | W_out]
    W_rz = w_rz_ref[...]               # (3D,  2D)  [W_r  | W_z ] over concat(a_in,a_out,s)
    W_t = w_t_ref[...]                 # (3D,  D)
    W_o1 = w_o1_ref[...]               # (D+Da, D)
    W_o2 = w_o2_ref[...]               # (D,   D)
    bias = b_ref[...]                  # (5,   2D)
    b_io = jnp.broadcast_to(bias[0:1, :], (rows, 2 * D))
    b_rz = jnp.broadcast_to(bias[1:2, :], (rows, 2 * D))
    b_t = jnp.broadcast_to(bias[2:3, :D], (rows, D))
    b_o1 = bias[3:4, :D]
    b_o2 = bias[4:5, :D]

    for _ in range(n_steps):
        io = dot(s, W_io) + b_io                        # in_fc | out_fc fused
        a_in = dot(A, io[:, :D])                        # bmm(A_in, in_states)
        a_out = dot(AT, io[:, D:])                      # bmm(A_out, out_states)
        x = jnp.concatenate([a_in, a_out, s], axis=-1)  # (rows, 3D)
        rz = jax.nn.sigmoid(dot(x, W_rz) + b_rz)        # reset | update fused
        r = rz[:, :D]
        z = rz[:, D:]
        joined = jnp.concatenate([a_in, a_out, r * s], axis=-1)
        h_hat = jnp.tanh(dot(joined, W_t) + b_t)
        s = (1.0 - z) * s + z * h_hat

    # output_layer: Linear(D+Da -> D) + Tanh + Linear(D -> D)
    hidden = jnp.tanh(dot(jnp.concatenate([s, anno], axis=-1), W_o1) + b_o1)
    out_ref[0] = dot(hidden, W_o2) + b_o2


def _choose_block_batch(batch, n_node, target_rows=256):
    """Largest divisor of `batch` with block_batch * n_node <= target_rows."""
    bb = max(1, min(batch, max(1, target_rows // n_node)))
    while batch % bb:
        bb -= 1
    return bb


def ggnn_rnn_cell_forward(params, inputs, A, *, num_nodes, num_units, input_dim,
                          n_steps, block_batch=None):
    """params: dict of pre-transposed weights [in, out] and biases [1, out]."""
    B = inputs.shape[0]
    N, D, Da = num_nodes, num_units, input_dim
    assert D >= Da, "state_dim must be >= annotation_dim (for zero padding)"
    # TODO(synk): n_edge_types > 1 has no shape-consistent reference bmm; E = 1 only.

    Bb = block_batch or _choose_block_batch(B, N)
    assert B % Bb == 0
    G = B // Bb
    M = Bb * N
    f32 = jnp.float32

    anno = inputs.reshape(B, N, Da).astype(f32)
    prop0 = jnp.concatenate([anno, jnp.zeros((B, N, D - Da), f32)], axis=2)
    prop0 = prop0.reshape(G, M, D)

    # Block-diagonal adjacency: one (M, M) matmul replaces Bb tiny bmm's.
    A = A.astype(f32).reshape(G, Bb, N, N)
    eye = jnp.eye(Bb, dtype=f32)
    A_bd = jnp.einsum("gbij,bc->gbicj", A, eye).reshape(G, M, M)
    AT_bd = jnp.swapaxes(A_bd, 1, 2)

    # Fused weights (concatenated once, in the wrapper, not in-kernel).
    W_io = jnp.concatenate([params["w_in"], params["w_out"]], axis=1)            # (D, 2D)
    W_rz = jnp.concatenate([
        jnp.concatenate([params["wr_in"], params["wz_in"]], axis=1),
        jnp.concatenate([params["wr_out"], params["wz_out"]], axis=1),
        jnp.concatenate([params["wr_cur"], params["wz_cur"]], axis=1)], axis=0)  # (3D, 2D)
    W_t = jnp.concatenate(
        [params["wt_in"], params["wt_out"], params["wt_cur"]], axis=0)           # (3D, D)
    W_o1 = jnp.concatenate([params["wo1_s"], params["wo1_a"]], axis=0)           # (D+Da, D)
    W_o2 = params["wo2"]                                                         # (D, D)

    def row(*bs):
        v = jnp.concatenate([b.reshape(-1) for b in bs])
        return jnp.pad(v, (0, 2 * D - v.shape[0]))

    bias_pack = jnp.stack([
        row(params["b_in"], params["b_out"]),
        row(params["br"], params["bz"]),
        row(params["bt"]),
        row(params["bo1"]),
        row(params["bo2"]),
    ], axis=0)                                                                    # (5, 2D)

    def per_block(last):
        return pl.BlockSpec((1, M, last), lambda g: (g, 0, 0))

    def full(arr):
        return pl.BlockSpec(arr.shape, lambda g: (0, 0))

    in_specs = [per_block(D), per_block(M), per_block(M),
                full(W_io), full(W_rz), full(W_t), full(W_o1), full(W_o2),
                full(bias_pack)]

    out = pl.pallas_call(
        functools.partial(_ggnn_kernel, n_steps, D, Da),
        out_shape=jax.ShapeDtypeStruct((G, M, D), f32),
        grid=(G,),
        in_specs=in_specs,
        out_specs=per_block(D),
        compiler_params=pltpu.CompilerParams(dimension_semantics=("parallel",)),
    )(prop0, A_bd, AT_bd, W_io, W_rz, W_t, W_o1, W_o2, bias_pack)

    out_flat = out.reshape(B, N * D)
    return out_flat, out_flat   # (output, hidden_state) — identical, as in the module


def reference_forward(p, inputs, A, *, num_nodes, num_units, input_dim, n_steps):
    """Pure-JAX mirror of the PyTorch forward (uses explicit concats)."""
    hp = jax.lax.Precision.HIGHEST
    B = inputs.shape[0]
    N, D, Da = num_nodes, num_units, input_dim
    anno = inputs.reshape(B, N, Da).astype(jnp.float32)
    prop = jnp.concatenate([anno, jnp.zeros((B, N, D - Da), jnp.float32)], 2)
    A_in = A.astype(jnp.float32)
    A_out = jnp.swapaxes(A_in, 1, 2)

    def lin(x, w, b):
        return jnp.matmul(x, w, precision=hp) + b

    wr = jnp.concatenate([p["wr_in"], p["wr_out"], p["wr_cur"]], 0)
    wz = jnp.concatenate([p["wz_in"], p["wz_out"], p["wz_cur"]], 0)
    wt = jnp.concatenate([p["wt_in"], p["wt_out"], p["wt_cur"]], 0)
    wo1 = jnp.concatenate([p["wo1_s"], p["wo1_a"]], 0)

    for _ in range(n_steps):
        in_s = lin(prop, p["w_in"], p["b_in"])
        out_s = lin(prop, p["w_out"], p["b_out"])
        a_in = jnp.matmul(A_in, in_s, precision=hp)
        a_out = jnp.matmul(A_out, out_s, precision=hp)
        a = jnp.concatenate([a_in, a_out, prop], 2)
        r = jax.nn.sigmoid(lin(a, wr, p["br"]))
        z = jax.nn.sigmoid(lin(a, wz, p["bz"]))
        joined = jnp.concatenate([a_in, a_out, r * prop], 2)
        h_hat = jnp.tanh(lin(joined, wt, p["bt"]))
        prop = (1.0 - z) * prop + z * h_hat

    joined_state = jnp.concatenate([prop, anno], 2)
    hidden = jnp.tanh(lin(joined_state, wo1, p["bo1"]))
    out = lin(hidden, p["wo2"], p["bo2"])
    return out.reshape(B, N * D)


if __name__ == "__main__":
    # Small shapes consistent with the module's forward.
    input_dim = 4      # annotation_dim
    num_units = 32     # state_dim
    num_nodes = 8
    n_steps = 3
    N, D, Da = num_nodes, num_units, input_dim

    key = jax.random.PRNGKey(0)
    keys = jax.random.split(key, 32)

    def w(k, shape):
        return (0.02 * jax.random.normal(k, shape)).astype(jnp.float32)

    params = {
        "w_in":  w(keys[0], (D, D)),  "b_in":  w(keys[1], (1, D)),
        "w_out": w(keys[2], (D, D)),  "b_out": w(keys[3], (1, D)),
        "wr_in": w(keys[4], (D, D)),  "wr_out": w(keys[5], (D, D)),
        "wr_cur": w(keys[6], (D, D)), "br": w(keys[7], (1, D)),
        "wz_in": w(keys[8], (D, D)),  "wz_out": w(keys[9], (D, D)),
        "wz_cur": w(keys[10], (D, D)), "bz": w(keys[11], (1, D)),
        "wt_in": w(keys[12], (D, D)), "wt_out": w(keys[13], (D, D)),
        "wt_cur": w(keys[14], (D, D)), "bt": w(keys[15], (1, D)),
        "wo1_s": w(keys[16], (D, D)), "wo1_a": w(keys[17], (Da, D)),
        "bo1": w(keys[18], (1, D)),
        "wo2": w(keys[19], (D, D)),  "bo2": w(keys[20], (1, D)),
    }

    def check(B, kin, kadj):
        inputs = jax.random.normal(kin, (B, N * Da), jnp.float32)
        adjacency = (jax.random.uniform(kadj, (B, N, N)) < 0.3).astype(jnp.float32)
        out, hidden = ggnn_rnn_cell_forward(
            params, inputs, adjacency,
            num_nodes=N, num_units=D, input_dim=Da, n_steps=n_steps)
        out = jax.block_until_ready(out)
        hidden = jax.block_until_ready(hidden)
        assert out.shape == (B, N * D)
        assert hidden.shape == (B, N * D)
        ref = reference_forward(
            params, inputs, adjacency,
            num_nodes=N, num_units=D, input_dim=Da, n_steps=n_steps)
        max_err = float(jnp.max(jnp.abs(out - ref)))
        assert max_err < 5e-3, f"kernel/reference mismatch (B={B}): {max_err}"

    # Toy shape from the spec (B=2) plus a larger batch to exercise batch packing.
    check(2, keys[30], keys[31])
    check(16, keys[28], keys[29])

    print("KERNEL_OK")
</pallas_src>

<mosaic_0001>
module attributes {stable_mosaic.version = 11 : i64} {
  func.func @_ggnn_kernel(%arg0: i32, %arg1: memref<1x16x32xf32, #tpu.memory_space<vmem>>, %arg2: memref<1x16x16xf32, #tpu.memory_space<vmem>>, %arg3: memref<1x16x16xf32, #tpu.memory_space<vmem>>, %arg4: memref<32x64xf32, #tpu.memory_space<vmem>>, %arg5: memref<96x64xf32, #tpu.memory_space<vmem>>, %arg6: memref<96x32xf32, #tpu.memory_space<vmem>>, %arg7: memref<36x32xf32, #tpu.memory_space<vmem>>, %arg8: memref<32x32xf32, #tpu.memory_space<vmem>>, %arg9: memref<5x64xf32, #tpu.memory_space<vmem>>, %arg10: memref<1x16x32xf32, #tpu.memory_space<vmem>>) attributes {dimension_semantics = [#tpu.dimension_semantics<parallel>], iteration_bounds = array<i64: 1>, scalar_prefetch = 0 : i64, scratch_operands = 0 : i64, tpu.core_type = #tpu.core_type<tc>, window_params = [{transform_indices = @transform_0, window_bounds = array<i64: 1, 16, 32>}, {transform_indices = @transform_1, window_bounds = array<i64: 1, 16, 16>}, {transform_indices = @transform_2, window_bounds = array<i64: 1, 16, 16>}, {pipeline_mode = #tpu.pipeline_mode<synchronous>, transform_indices = @transform_3, window_bounds = array<i64: 32, 64>}, {pipeline_mode = #tpu.pipeline_mode<synchronous>, transform_indices = @transform_4, window_bounds = array<i64: 96, 64>}, {pipeline_mode = #tpu.pipeline_mode<synchronous>, transform_indices = @transform_5, window_bounds = array<i64: 96, 32>}, {pipeline_mode = #tpu.pipeline_mode<synchronous>, transform_indices = @transform_6, window_bounds = array<i64: 36, 32>}, {pipeline_mode = #tpu.pipeline_mode<synchronous>, transform_indices = @transform_7, window_bounds = array<i64: 32, 32>}, {pipeline_mode = #tpu.pipeline_mode<synchronous>, transform_indices = @transform_8, window_bounds = array<i64: 5, 64>}, {transform_indices = @transform_9, window_bounds = array<i64: 1, 16, 32>}]} {
    %c0 = arith.constant 0 : index
    %c0_0 = arith.constant 0 : index
    %c0_1 = arith.constant 0 : index
    %0 = vector.load %arg1[%c0, %c0_0, %c0_1] : memref<1x16x32xf32, #tpu.memory_space<vmem>>, vector<1x16x32xf32>
    %1 = vector.shape_cast %0 : vector<1x16x32xf32> to vector<16x32xf32>
    %2 = vector.extract_strided_slice %1 {offsets = [0, 0], sizes = [16, 4], strides = [1, 1]} : vector<16x32xf32> to vector<16x4xf32>
    %c0_2 = arith.constant 0 : index
    %c0_3 = arith.constant 0 : index
    %c0_4 = arith.constant 0 : index
    %3 = vector.load %arg2[%c0_2, %c0_3, %c0_4] : memref<1x16x16xf32, #tpu.memory_space<vmem>>, vector<1x16x16xf32>
    %4 = vector.shape_cast %3 : vector<1x16x16xf32> to vector<16x16xf32>
    %c0_5 = arith.constant 0 : index
    %c0_6 = arith.constant 0 : index
    %c0_7 = arith.constant 0 : index
    %5 = vector.load %arg3[%c0_5, %c0_6, %c0_7] : memref<1x16x16xf32, #tpu.memory_space<vmem>>, vector<1x16x16xf32>
    %6 = vector.shape_cast %5 : vector<1x16x16xf32> to vector<16x16xf32>
    %c0_8 = arith.constant 0 : index
    %c0_9 = arith.constant 0 : index
    %7 = vector.load %arg4[%c0_8, %c0_9] : memref<32x64xf32, #tpu.memory_space<vmem>>, vector<32x64xf32>
    %c0_10 = arith.constant 0 : index
    %c0_11 = arith.constant 0 : index
    %8 = vector.load %arg5[%c0_10, %c0_11] : memref<96x64xf32, #tpu.memory_space<vmem>>, vector<96x64xf32>
    %c0_12 = arith.constant 0 : index
    %c0_13 = arith.constant 0 : index
    %9 = vector.load %arg6[%c0_12, %c0_13] : memref<96x32xf32, #tpu.memory_space<vmem>>, vector<96x32xf32>
    %c0_14 = arith.constant 0 : index
    %c0_15 = arith.constant 0 : index
    %10 = vector.load %arg7[%c0_14, %c0_15] : memref<36x32xf32, #tpu.memory_space<vmem>>, vector<36x32xf32>
    %c0_16 = arith.constant 0 : index
    %c0_17 = arith.constant 0 : index
    %11 = vector.load %arg8[%c0_16, %c0_17] : memref<32x32xf32, #tpu.memory_space<vmem>>, vector<32x32xf32>
    %c0_18 = arith.constant 0 : index
    %c0_19 = arith.constant 0 : index
    %12 = vector.load %arg9[%c0_18, %c0_19] : memref<5x64xf32, #tpu.memory_space<vmem>>, vector<5x64xf32>
    %13 = vector.extract_strided_slice %12 {offsets = [0, 0], sizes = [1, 64], strides = [1, 1]} : vector<5x64xf32> to vector<1x64xf32>
    %14 = vector.shape_cast %13 : vector<1x64xf32> to vector<1x64xf32>
    %15 = vector.broadcast %14 : vector<1x64xf32> to vector<16x64xf32>
    %16 = vector.extract_strided_slice %12 {offsets = [1, 0], sizes = [1, 64], strides = [1, 1]} : vector<5x64xf32> to vector<1x64xf32>
    %17 = vector.shape_cast %16 : vector<1x64xf32> to vector<1x64xf32>
    %18 = vector.broadcast %17 : vector<1x64xf32> to vector<16x64xf32>
    %19 = vector.extract_strided_slice %12 {offsets = [2, 0], sizes = [1, 32], strides = [1, 1]} : vector<5x64xf32> to vector<1x32xf32>
    %20 = vector.shape_cast %19 : vector<1x32xf32> to vector<1x32xf32>
    %21 = vector.broadcast %20 : vector<1x32xf32> to vector<16x32xf32>
    %22 = vector.extract_strided_slice %12 {offsets = [3, 0], sizes = [1, 32], strides = [1, 1]} : vector<5x64xf32> to vector<1x32xf32>
    %23 = vector.extract_strided_slice %12 {offsets = [4, 0], sizes = [1, 32], strides = [1, 1]} : vector<5x64xf32> to vector<1x32xf32>
    %cst = arith.constant dense<0.000000e+00> : vector<16x64xf32>
    %24 = tpu.matmul %1, %7, %cst {dimension_numbers = #tpu.dot_dimension_numbers<[1], [0], [0], [1], [0, 0, 1, 1], [], []>} : vector<16x32xf32>, vector<32x64xf32>, vector<16x64xf32> -> vector<16x64xf32>
    %25 = arith.addf %24, %15 : vector<16x64xf32>
    %26 = vector.extract_strided_slice %25 {offsets = [0, 0], sizes = [16, 32], strides = [1, 1]} : vector<16x64xf32> to vector<16x32xf32>
    %cst_20 = arith.constant dense<0.000000e+00> : vector<16x32xf32>
    %27 = tpu.matmul %4, %26, %cst_20 {dimension_numbers = #tpu.dot_dimension_numbers<[1], [0], [0], [1], [0, 0, 1, 1], [], []>} : vector<16x16xf32>, vector<16x32xf32>, vector<16x32xf32> -> vector<16x32xf32>
    %28 = vector.extract_strided_slice %25 {offsets = [0, 32], sizes = [16, 32], strides = [1, 1]} : vector<16x64xf32> to vector<16x32xf32>
    %cst_21 = arith.constant dense<0.000000e+00> : vector<16x32xf32>
    %29 = tpu.matmul %6, %28, %cst_21 {dimension_numbers = #tpu.dot_dimension_numbers<[1], [0], [0], [1], [0, 0, 1, 1], [], []>} : vector<16x16xf32>, vector<16x32xf32>, vector<16x32xf32> -> vector<16x32xf32>
    %30 = tpu.concatenate %27, %29, %1 in 1 : vector<16x32xf32>, vector<16x32xf32>, vector<16x32xf32> -> vector<16x96xf32>
    %cst_22 = arith.constant dense<0.000000e+00> : vector<16x64xf32>
    %31 = tpu.matmul %30, %8, %cst_22 {dimension_numbers = #tpu.dot_dimension_numbers<[1], [0], [0], [1], [0, 0, 1, 1], [], []>} : vector<16x96xf32>, vector<96x64xf32>, vector<16x64xf32> -> vector<16x64xf32>
    %32 = arith.addf %31, %18 : vector<16x64xf32>
    %33 = arith.negf %32 : vector<16x64xf32>
    %34 = math.exp %33 : vector<16x64xf32>
    %cst_23 = arith.constant 1.000000e+00 : f32
    %35 = vector.broadcast %cst_23 : f32 to vector<16x64xf32>
    %36 = arith.addf %35, %34 : vector<16x64xf32>
    %37 = arith.divf %35, %36 : vector<16x64xf32>
    %38 = vector.extract_strided_slice %37 {offsets = [0, 0], sizes = [16, 32], strides = [1, 1]} : vector<16x64xf32> to vector<16x32xf32>
    %39 = vector.extract_strided_slice %37 {offsets = [0, 32], sizes = [16, 32], strides = [1, 1]} : vector<16x64xf32> to vector<16x32xf32>
    %40 = arith.mulf %38, %1 : vector<16x32xf32>
    %41 = tpu.concatenate %27, %29, %40 in 1 : vector<16x32xf32>, vector<16x32xf32>, vector<16x32xf32> -> vector<16x96xf32>
    %cst_24 = arith.constant dense<0.000000e+00> : vector<16x32xf32>
    %42 = tpu.matmul %41, %9, %cst_24 {dimension_numbers = #tpu.dot_dimension_numbers<[1], [0], [0], [1], [0, 0, 1, 1], [], []>} : vector<16x96xf32>, vector<96x32xf32>, vector<16x32xf32> -> vector<16x32xf32>
    %43 = arith.addf %42, %21 : vector<16x32xf32>
    %44 = math.tanh %43 : vector<16x32xf32>
    %cst_25 = arith.constant 1.000000e+00 : f32
    %45 = vector.broadcast %cst_25 : f32 to vector<16x32xf32>
    %46 = arith.subf %45, %39 : vector<16x32xf32>
    %47 = arith.mulf %46, %1 : vector<16x32xf32>
    %48 = arith.mulf %39, %44 : vector<16x32xf32>
    %49 = arith.addf %47, %48 : vector<16x32xf32>
    %cst_26 = arith.constant dense<0.000000e+00> : vector<16x64xf32>
    %50 = tpu.matmul %49, %7, %cst_26 {dimension_numbers = #tpu.dot_dimension_numbers<[1], [0], [0], [1], [0, 0, 1, 1], [], []>} : vector<16x32xf32>, vector<32x64xf32>, vector<16x64xf32> -> vector<16x64xf32>
    %51 = arith.addf %50, %15 : vector<16x64xf32>
    %52 = vector.extract_strided_slice %51 {offsets = [0, 0], sizes = [16, 32], strides = [1, 1]} : vector<16x64xf32> to vector<16x32xf32>
    %cst_27 = arith.constant dense<0.000000e+00> : vector<16x32xf32>
    %53 = tpu.matmul %4, %52, %cst_27 {dimension_numbers = #tpu.dot_dimension_numbers<[1], [0], [0], [1], [0, 0, 1, 1], [], []>} : vector<16x16xf32>, vector<16x32xf32>, vector<16x32xf32> -> vector<16x32xf32>
    %54 = vector.extract_strided_slice %51 {offsets = [0, 32], sizes = [16, 32], strides = [1, 1]} : vector<16x64xf32> to vector<16x32xf32>
    %cst_28 = arith.constant dense<0.000000e+00> : vector<16x32xf32>
    %55 = tpu.matmul %6, %54, %cst_28 {dimension_numbers = #tpu.dot_dimension_numbers<[1], [0], [0], [1], [0, 0, 1, 1], [], []>} : vector<16x16xf32>, vector<16x32xf32>, vector<16x32xf32> -> vector<16x32xf32>
    %56 = tpu.concatenate %53, %55, %49 in 1 : vector<16x32xf32>, vector<16x32xf32>, vector<16x32xf32> -> vector<16x96xf32>
    %cst_29 = arith.constant dense<0.000000e+00> : vector<16x64xf32>
    %57 = tpu.matmul %56, %8, %cst_29 {dimension_numbers = #tpu.dot_dimension_numbers<[1], [0], [0], [1], [0, 0, 1, 1], [], []>} : vector<16x96xf32>, vector<96x64xf32>, vector<16x64xf32> -> vector<16x64xf32>
    %58 = arith.addf %57, %18 : vector<16x64xf32>
    %59 = arith.negf %58 : vector<16x64xf32>
    %60 = math.exp %59 : vector<16x64xf32>
    %cst_30 = arith.constant 1.000000e+00 : f32
    %61 = vector.broadcast %cst_30 : f32 to vector<16x64xf32>
    %62 = arith.addf %61, %60 : vector<16x64xf32>
    %63 = arith.divf %61, %62 : vector<16x64xf32>
    %64 = vector.extract_strided_slice %63 {offsets = [0, 0], sizes = [16, 32], strides = [1, 1]} : vector<16x64xf32> to vector<16x32xf32>
    %65 = vector.extract_strided_slice %63 {offsets = [0, 32], sizes = [16, 32], strides = [1, 1]} : vector<16x64xf32> to vector<16x32xf32>
    %66 = arith.mulf %64, %49 : vector<16x32xf32>
    %67 = tpu.concatenate %53, %55, %66 in 1 : vector<16x32xf32>, vector<16x32xf32>, vector<16x32xf32> -> vector<16x96xf32>
    %cst_31 = arith.constant dense<0.000000e+00> : vector<16x32xf32>
    %68 = tpu.matmul %67, %9, %cst_31 {dimension_numbers = #tpu.dot_dimension_numbers<[1], [0], [0], [1], [0, 0, 1, 1], [], []>} : vector<16x96xf32>, vector<96x32xf32>, vector<16x32xf32> -> vector<16x32xf32>
    %69 = arith.addf %68, %21 : vector<16x32xf32>
    %70 = math.tanh %69 : vector<16x32xf32>
    %cst_32 = arith.constant 1.000000e+00 : f32
    %71 = vector.broadcast %cst_32 : f32 to vector<16x32xf32>
    %72 = arith.subf %71, %65 : vector<16x32xf32>
    %73 = arith.mulf %72, %49 : vector<16x32xf32>
    %74 = arith.mulf %65, %70 : vector<16x32xf32>
    %75 = arith.addf %73, %74 : vector<16x32xf32>
    %cst_33 = arith.constant dense<0.000000e+00> : vector<16x64xf32>
    %76 = tpu.matmul %75, %7, %cst_33 {dimension_numbers = #tpu.dot_dimension_numbers<[1], [0], [0], [1], [0, 0, 1, 1], [], []>} : vector<16x32xf32>, vector<32x64xf32>, vector<16x64xf32> -> vector<16x64xf32>
    %77 = arith.addf %76, %15 : vector<16x64xf32>
    %78 = vector.extract_strided_slice %77 {offsets = [0, 0], sizes = [16, 32], strides = [1, 1]} : vector<16x64xf32> to vector<16x32xf32>
    %cst_34 = arith.constant dense<0.000000e+00> : vector<16x32xf32>
    %79 = tpu.matmul %4, %78, %cst_34 {dimension_numbers = #tpu.dot_dimension_numbers<[1], [0], [0], [1], [0, 0, 1, 1], [], []>} : vector<16x16xf32>, vector<16x32xf32>, vector<16x32xf32> -> vector<16x32xf32>
    %80 = vector.extract_strided_slice %77 {offsets = [0, 32], sizes = [16, 32], strides = [1, 1]} : vector<16x64xf32> to vector<16x32xf32>
    %cst_35 = arith.constant dense<0.000000e+00> : vector<16x32xf32>
    %81 = tpu.matmul %6, %80, %cst_35 {dimension_numbers = #tpu.dot_dimension_numbers<[1], [0], [0], [1], [0, 0, 1, 1], [], []>} : vector<16x16xf32>, vector<16x32xf32>, vector<16x32xf32> -> vector<16x32xf32>
    %82 = tpu.concatenate %79, %81, %75 in 1 : vector<16x32xf32>, vector<16x32xf32>, vector<16x32xf32> -> vector<16x96xf32>
    %cst_36 = arith.constant dense<0.000000e+00> : vector<16x64xf32>
    %83 = tpu.matmul %82, %8, %cst_36 {dimension_numbers = #tpu.dot_dimension_numbers<[1], [0], [0], [1], [0, 0, 1, 1], [], []>} : vector<16x96xf32>, vector<96x64xf32>, vector<16x64xf32> -> vector<16x64xf32>
    %84 = arith.addf %83, %18 : vector<16x64xf32>
    %85 = arith.negf %84 : vector<16x64xf32>
    %86 = math.exp %85 : vector<16x64xf32>
    %cst_37 = arith.constant 1.000000e+00 : f32
    %87 = vector.broadcast %cst_37 : f32 to vector<16x64xf32>
    %88 = arith.addf %87, %86 : vector<16x64xf32>
    %89 = arith.divf %87, %88 : vector<16x64xf32>
    %90 = vector.extract_strided_slice %89 {offsets = [0, 0], sizes = [16, 32], strides = [1, 1]} : vector<16x64xf32> to vector<16x32xf32>
    %91 = vector.extract_strided_slice %89 {offsets = [0, 32], sizes = [16, 32], strides = [1, 1]} : vector<16x64xf32> to vector<16x32xf32>
    %92 = arith.mulf %90, %75 : vector<16x32xf32>
    %93 = tpu.concatenate %79, %81, %92 in 1 : vector<16x32xf32>, vector<16x32xf32>, vector<16x32xf32> -> vector<16x96xf32>
    %cst_38 = arith.constant dense<0.000000e+00> : vector<16x32xf32>
    %94 = tpu.matmul %93, %9, %cst_38 {dimension_numbers = #tpu.dot_dimension_numbers<[1], [0], [0], [1], [0, 0, 1, 1], [], []>} : vector<16x96xf32>, vector<96x32xf32>, vector<16x32xf32> -> vector<16x32xf32>
    %95 = arith.addf %94, %21 : vector<16x32xf32>
    %96 = math.tanh %95 : vector<16x32xf32>
    %cst_39 = arith.constant 1.000000e+00 : f32
    %97 = vector.broadcast %cst_39 : f32 to vector<16x32xf32>
    %98 = arith.subf %97, %91 : vector<16x32xf32>
    %99 = arith.mulf %98, %75 : vector<16x32xf32>
    %100 = arith.mulf %91, %96 : vector<16x32xf32>
    %101 = arith.addf %99, %100 : vector<16x32xf32>
    %102 = tpu.concatenate %101, %2 in 1 : vector<16x32xf32>, vector<16x4xf32> -> vector<16x36xf32>
    %cst_40 = arith.constant dense<0.000000e+00> : vector<16x32xf32>
    %103 = tpu.matmul %102, %10, %cst_40 {dimension_numbers = #tpu.dot_dimension_numbers<[1], [0], [0], [1], [0, 0, 1, 1], [], []>} : vector<16x36xf32>, vector<36x32xf32>, vector<16x32xf32> -> vector<16x32xf32>
    %104 = vector.broadcast %22 : vector<1x32xf32> to vector<16x32xf32>
    %105 = arith.addf %103, %104 : vector<16x32xf32>
    %106 = math.tanh %105 : vector<16x32xf32>
    %cst_41 = arith.constant dense<0.000000e+00> : vector<16x32xf32>
    %107 = tpu.matmul %106, %11, %cst_41 {dimension_numbers = #tpu.dot_dimension_numbers<[1], [0], [0], [1], [0, 0, 1, 1], [], []>} : vector<16x32xf32>, vector<32x32xf32>, vector<16x32xf32> -> vector<16x32xf32>
    %108 = vector.broadcast %23 : vector<1x32xf32> to vector<16x32xf32>
    %109 = arith.addf %107, %108 : vector<16x32xf32>
    %c0_42 = arith.constant 0 : index
    %c0_43 = arith.constant 0 : index
    %c0_44 = arith.constant 0 : index
    %110 = vector.load %arg10[%c0_42, %c0_43, %c0_44] : memref<1x16x32xf32, #tpu.memory_space<vmem>>, vector<1x16x32xf32>
    %111 = vector.shape_cast %110 : vector<1x16x32xf32> to vector<16x32xf32>
    %112 = vector.shape_cast %109 : vector<16x32xf32> to vector<1x16x32xf32>
    tpu.vector_store %arg10[%c0_42, %c0_43, %c0_44], %112 {strides = array<i32>} : memref<1x16x32xf32, #tpu.memory_space<vmem>>, vector<1x16x32xf32>,
    return
  }
  func.func @transform_0(%arg0: i32) -> (i32, i32, i32) {
    %c0_i32 = arith.constant 0 : i32
    %c0_i32_0 = arith.constant 0 : i32
    %c0_i32_1 = arith.constant 0 : i32
    return %arg0, %c0_i32, %c0_i32_0 : i32, i32, i32
  }
  func.func @transform_1(%arg0: i32) -> (i32, i32, i32) {
    %c0_i32 = arith.constant 0 : i32
    %c0_i32_0 = arith.constant 0 : i32
    %c0_i32_1 = arith.constant 0 : i32
    return %arg0, %c0_i32, %c0_i32_0 : i32, i32, i32
  }
  func.func @transform_2(%arg0: i32) -> (i32, i32, i32) {
    %c0_i32 = arith.constant 0 : i32
    %c0_i32_0 = arith.constant 0 : i32
    %c0_i32_1 = arith.constant 0 : i32
    return %arg0, %c0_i32, %c0_i32_0 : i32, i32, i32
  }
  func.func @transform_3(%arg0: i32) -> (i32, i32) {
    %c0_i32 = arith.constant 0 : i32
    %c0_i32_0 = arith.constant 0 : i32
    %c0_i32_1 = arith.constant 0 : i32
    return %c0_i32, %c0_i32_0 : i32, i32
  }
  func.func @transform_4(%arg0: i32) -> (i32, i32) {
    %c0_i32 = arith.constant 0 : i32
    %c0_i32_0 = arith.constant 0 : i32
    %c0_i32_1 = arith.constant 0 : i32
    return %c0_i32, %c0_i32_0 : i32, i32
  }
  func.func @transform_5(%arg0: i32) -> (i32, i32) {
    %c0_i32 = arith.constant 0 : i32
    %c0_i32_0 = arith.constant 0 : i32
    %c0_i32_1 = arith.constant 0 : i32
    return %c0_i32, %c0_i32_0 : i32, i32
  }
  func.func @transform_6(%arg0: i32) -> (i32, i32) {
    %c0_i32 = arith.constant 0 : i32
    %c0_i32_0 = arith.constant 0 : i32
    %c0_i32_1 = arith.constant 0 : i32
    return %c0_i32, %c0_i32_0 : i32, i32
  }
  func.func @transform_7(%arg0: i32) -> (i32, i32) {
    %c0_i32 = arith.constant 0 : i32
    %c0_i32_0 = arith.constant 0 : i32
    %c0_i32_1 = arith.constant 0 : i32
    return %c0_i32, %c0_i32_0 : i32, i32
  }
  func.func @transform_8(%arg0: i32) -> (i32, i32) {
    %c0_i32 = arith.constant 0 : i32
    %c0_i32_0 = arith.constant 0 : i32
    %c0_i32_1 = arith.constant 0 : i32
    return %c0_i32, %c0_i32_0 : i32, i32
  }
  func.func @transform_9(%arg0: i32) -> (i32, i32, i32) {
    %c0_i32 = arith.constant 0 : i32
    %c0_i32_0 = arith.constant 0 : i32
    %c0_i32_1 = arith.constant 0 : i32
    return %arg0, %c0_i32, %c0_i32_0 : i32, i32, i32
  }
}

</mosaic_0001>

<bundles_post_ra>
// kernel: tpu_custom_call.1
= control target key start
LH: loop header
LB: loop body
LE: loop exit
PB: predicated region body
PF: predicated region fallthrough
CT: control target
= control target key end

     0   :  { %vm89_vm0 = vcmask 261120   ;;  %s2968_s0 = inlined_call_operand.vmem [shape: f32[1,16,32], index: 0, kind: input, shape index: {}]   ;;  %s2969_s1 = inlined_call_operand.vmem [shape: f32[1,16,16], index: 1, kind: input, shape index: {}]   ;;  %s2970_s2 = inlined_call_operand.vmem [shape: f32[1,16,16], index: 2, kind: input, shape index: {}]   ;;  %s2971_s3 = inlined_call_operand.vmem [shape: f32[32,64], index: 3, kind: input, shape index: {}]   ;;  %s2972_s4 = inlined_call_operand.vmem [shape: f32[96,64], index: 4, kind: input, shape index: {}]   ;;  %s2973_s5 = inlined_call_operand.vmem [shape: f32[96,32], index: 5, kind: input, shape index: {}]   ;;  %s2974_s6 = inlined_call_operand.vmem [shape: f32[36,32], index: 6, kind: input, shape index: {}]   ;;  %s2975_s7 = inlined_call_operand.vmem [shape: f32[32,32], index: 7, kind: input, shape index: {}]   ;;  %s2976_s8 = inlined_call_operand.vmem [shape: f32[5,64], index: 8, kind: input, shape index: {}]   ;;  %s2977_s9 = inlined_call_operand.hbm [shape: f32[1,16,32], index: 9, kind: output, shape index: {}]  }
   0x1   :  { %v39_v0 = vld [vmem:[%s2971_s3] sm:$0xff]  ;;  %v40_v1 = vld [vmem:[%s2971_s3 + $0x8] sm:$0xff]  ;;  %v41_v2 = vld [vmem:[%s2971_s3 + $0x10] sm:$0xff] }
   0x2   :  { %v2510_v3 = vpack.c.bf16 %v40_v1, %v39_v0  ;;  %v42_v4 = vld [vmem:[%s2971_s3 + $0x18] sm:$0xff]  ;;  %v2518_v5 = vld [vmem:[%s2968_s0] sm:$0xff] }
   0x3   :  { %v2520_v6 = vpack.c.bf16 %v42_v4, %v41_v2  ;;  %1899 = vmatprep.mubr.msk.f32.mxu0 %vm89_vm0, %v2518_v5 }
   0x4   :  { %14 = vsyncpa [#allocation3], 0  ;;  %2153 = vmatprep.subr.bf16.mxu0 %v2510_v3  ;;  %v2531_v7 = vld [vmem:[%s2968_s0 + $0x8] sm:$0xff]  ;;  %v77_v8 = vlaneseq  ;;  %v2541_v11 = vld [vmem:[%s2976_s8] sm:$0x1f]  ;;  %vm171_vm1 = vcmask 130048  }
   0x5   :  { %2155 = vmatpush3.bf16.msra.mxu0 %v2510_v3  ;;  %v2546_v12 = vld [vmem:[%s2969_s1] sm:$0xff]  ;;  %s2445_s0 = smov 96   ;;  %v2559_v20 = vld [vmem:[%s2969_s1 + $0x8] sm:$0xff]  ;;  %v45_v29 = vld [vmem:[%s2972_s4 + $0x10] sm:$0xff]  ;;  %s2446_s1 = smov 32   ;;  %vm358_vm2 = vcmask 523264  }
   0x6   :  { %2157 = vmatprep.subr.bf16.mxu0 %v2520_v6  ;;  %v2535_v9 = vshrl.u32 %v77_v8, 7  ;;  %1906 = vmatprep.mubr.msk.f32.mxu1 %vm171_vm1, %v2546_v12  ;;  %v2564_v21 = vld [vmem:[%s2970_s2] sm:$0xff]  ;;  %v2573_v26 = vld [vmem:[%s2970_s2 + $0x8] sm:$0xff]  ;;  %v46_v31 = vld [vmem:[%s2972_s4 + $0x18] sm:$0xff]  ;;  %s2447_s28 = smov 64   ;;  %vm361_vm3 = vcmask 785408  }
   0x7   :  { %v43_v27 = vld [vmem:[%s2972_s4] sm:$0xff]  ;;  %v44_v28 = vld [vmem:[%s2972_s4 + $0x8] sm:$0xff]  ;;  %v2591_v32 = vpack.c.bf16 %v46_v31, %v45_v29  ;;  %v49_v38 = vld [vmem:[%s2972_s4 + $0x30] sm:$0xff]  ;;  %vm1527_vm4 = vcmask 1043456   ;;  %vm1520_vm5 = vcmask 293888  }
   0x8   :  { %v79_v10 = vsub.s32 0, %v2535_v9  ;;  %v2586_v30 = vpack.c.bf16 %v44_v28, %v43_v27  ;;  %v47_v33 = vld [vmem:[%s2972_s4 + $0x20] sm:$0xff]  ;;  %v48_v34 = vld [vmem:[%s2972_s4 + $0x28] sm:$0xff]  ;;  %v50_v39 = vld [vmem:[%s2972_s4 + $0x38] sm:$0xff] }
   0x9   :  { %2159 = vmatpush3.bf16.msra.mxu0 %v2520_v6  ;;  %v2602_v37 = vpack.c.bf16 %v48_v34, %v47_v33  ;;  %v2612_v40 = vpack.c.bf16 %v50_v39, %v49_v38  ;;  %v51_v41 = vld [vmem:[%s2972_s4 + $0x40] sm:$0xff]  ;;  %v52_v42 = vld [vmem:[%s2972_s4 + $0x48] sm:$0xff]  ;;  %v53_v44 = vld [vmem:[%s2972_s4 + $0x50] sm:$0xff] }
   0xa   :  { %v2551_v13 = vrot.slane %v2541_v11, %v79_v10  ;;  %2169 = vmatprep.subr.bf16.mxu0 %v2586_v30  ;;  %v2622_v43 = vpack.c.bf16 %v52_v42, %v51_v41  ;;  %v54_v45 = vld [vmem:[%s2972_s4 + $0x58] sm:$0xff]  ;;  %v55_v57 = vld [vmem:[%s2973_s5] sm:$0xff]  ;;  %v56_v58 = vld [vmem:[%s2973_s5 + $0x8] sm:$0xff] }
   0xb   :  { %v2633_v46 = vpack.c.bf16 %v54_v45, %v53_v44  ;;  %v57_v59 = vld [vmem:[%s2973_s5 + $0x10] sm:$0xff]  ;;  %v2669_v60 = vpack.c.bf16 %v56_v58, %v55_v57  ;;  %v58_v61 = vld [vmem:[%s2973_s5 + $0x18] sm:$0xff]  ;;  %v59_v63 = vld [vmem:[%s2973_s5 + $0x20] sm:$0xff] }
   0xc   :  { %1900 = vmatmul.mubr.msk.f32.vlgmr.msra.gmra.mrb[0].mxu0 %vm89_vm0, %v2531_v7  ;;  %v2674_v62 = vpack.c.bf16 %v58_v61, %v57_v59  ;;  %v60_v0 = vld [vmem:[%s2973_s5 + $0x28] sm:$0xff]  ;;  %v61_v2 = vld [vmem:[%s2973_s5 + $0x30] sm:$0xff]  ;;  %v62_v4 = vld [vmem:[%s2973_s5 + $0x38] sm:$0xff] }
   0xd   :  { %2171 = vmatpush3.bf16.msra.mxu0 %v2586_v30  ;;  %v2685_v1 = vpack.c.bf16 %v60_v0, %v59_v63  ;;  %v2695_v8 = vpack.c.bf16 %v62_v4, %v61_v2  ;;  %v63_v10 = vld [vmem:[%s2973_s5 + $0x40] sm:$0xff] }
   0xe   :  { %2173 = vmatprep.subr.bf16.mxu0 %v2591_v32 }
  0x11   :  { %2175 = vmatpush3.bf16.msra.mxu0 %v2591_v32 }
  0x12   :  { %2177 = vmatprep.subr.bf16.mxu0 %v2602_v37 }
  0x15   :  { %2179 = vmatpush3.bf16.msra.mxu0 %v2602_v37 }
  0x16   :  { %2181 = vmatprep.subr.bf16.mxu0 %v2612_v40 }
  0x19   :  { %2183 = vmatpush3.bf16.msra.mxu0 %v2612_v40 }
  0x1a   :  { %2185 = vmatprep.subr.bf16.mxu0 %v2622_v43 }
  0x1d   :  { %2187 = vmatpush3.bf16.msra.mxu0 %v2622_v43 }
  0x1e   :  { %2189 = vmatprep.subr.bf16.mxu0 %v2633_v46 }
  0x21   :  { %2191 = vmatpush3.bf16.msra.mxu0 %v2633_v46 }
  0x22   :  { %2217 = vmatprep.subr.bf16.mxu0 %v2510_v3 }
  0xdf   :  { %v1901_v14 = vpop.f32.mrb[0].mxu0 }
  0xe0   :  { %v168_v15 = vadd.f32 %v1901_v14, %v2551_v13  ;;  %v162_v16 = vpop.f32.mrb[1].mxu0  ;;  %v64_v14 = vld [vmem:[%s2973_s5 + $0x48] sm:$0xff] }
  0xe1   :  { %v163_v17 = vadd.f32 %v162_v16, %v2551_v13  ;;  %v65_v16 = vld [vmem:[%s2973_s5 + $0x50] sm:$0xff] }
  0xe3   :  { %v2366_v18 = vpack.i.bf16 %v168_v15, %v163_v17  ;;  %v2160_v19 = vpack.c.bf16 %v168_v15, %v163_v17  ;;  %v2705_v15 = vpack.c.bf16 %v64_v14, %v63_v10  ;;  %v66_v17 = vld [vmem:[%s2973_s5 + $0x58] sm:$0xff] }
  0xe5   :  { %2367 = vrot.lane.b32.xlu0 %v2366_v18, %s2445_s0  ;;  %2161 = vmatprep.subr.bf16.mxu1 %v2160_v19  ;;  %v2715_v18 = vpack.c.bf16 %v66_v17, %v65_v16 }
  0xe6   :  { %2163 = vmatpush3.bf16.msra.mxu1 %v2160_v19  ;;  %v83_v19 = vsub.s32 1, %v2535_v9 }
  0xe9   :  { %1907 = vmatmul.mubr.msk.f32.vlgmr.msra.gmra.mrb[0].mxu1 %vm171_vm1, %v2559_v20 }
  0xea   :  { %1913 = vmatprep.mubr.msk.f32.mxu1 %vm171_vm1, %v2564_v21 }
 0x157   :  { %v2368_v22 = vpop.permute.xlu0 %2367 }
 0x158   :  { %v2370_v23 = vunpack.i.h.bf16 %v2368_v22  ;;  %v2369_v24 = vunpack.i.l.bf16 %v2368_v22  ;;  %v2722_v22 = vrot.slane %v2541_v11, %v83_v19 }
 0x15a   :  { %v2164_v25 = vpack.c.bf16 %v2370_v23, %v2369_v24 }
 0x15c   :  { %2165 = vmatprep.subr.bf16.mxu1 %v2164_v25 }
 0x15d   :  { %2167 = vmatpush3.bf16.msra.mxu1 %v2164_v25 }
 0x15e   :  { %2193 = vmatprep.subr.bf16.mxu1 %v2669_v60 }
 0x160   :  { %1914 = vmatmul.mubr.msk.f32.vlgmr.msra.gmra.mrb[2].mxu1 %vm171_vm1, %v2573_v26 }
 0x161   :  { %2195 = vmatpush3.bf16.msra.mxu1 %v2669_v60 }
 0x162   :  { %2197 = vmatprep.subr.bf16.mxu1 %v2674_v62 }
 0x165   :  { %2199 = vmatpush3.bf16.msra.mxu1 %v2674_v62 }
 0x166   :  { %2201 = vmatprep.subr.bf16.mxu1 %v2685_v1 }
 0x169   :  { %2203 = vmatpush3.bf16.msra.mxu1 %v2685_v1 }
 0x16a   :  { %2205 = vmatprep.subr.bf16.mxu1 %v2695_v8 }
 0x16d   :  { %2207 = vmatpush3.bf16.msra.mxu1 %v2695_v8 }
 0x16e   :  { %2209 = vmatprep.subr.bf16.mxu1 %v2705_v15 }
 0x171   :  { %2211 = vmatpush3.bf16.msra.mxu1 %v2705_v15 }
 0x172   :  { %2213 = vmatprep.subr.bf16.mxu1 %v2715_v18 }
 0x175   :  { %2215 = vmatpush3.bf16.msra.mxu1 %v2715_v18 }
 0x1bc   :  { %v1908_v35 = vpop.f32.mrb[0].mxu1 }
 0x1bd   :  { %v244_v36 = vpop.f32.mrb[1].mxu1 }
 0x233   :  { %v1915_v47 = vpop.f32.mrb[2].mxu1 }
 0x234   :  { %346 = vrot.lane.b32.xlu1 %v1915_v47, %s2446_s1  ;;  %v333_v48 = vpop.f32.mrb[3].mxu1 }
 0x235   :  { %344 = vrot.lane.b32.xlu0 %v333_v48, %s2446_s1 }
 0x238   :  { %350 = vrot.lane.b32.xlu1 %v2518_v5, %s2447_s28 }
 0x239   :  { %352 = vrot.lane.b32.xlu0 %v2531_v7, %s2447_s28 }
 0x2a6   :  { %v347_v49 = vpop.permute.xlu1 %346 }
 0x2a7   :  { %v345_v50 = vpop.permute.xlu0 %344  ;;  %v2648_v53 = vsel %vm89_vm0, %v1908_v35, %v347_v49 }
 0x2a8   :  { %v2645_v51 = vsel %vm89_vm0, %v244_v36, %v345_v50 }
 0x2aa   :  { %v351_v52 = vpop.permute.xlu1 %350 }
 0x2ab   :  { %v359_v54 = vsel %vm358_vm2, %v2645_v51, %v351_v52  ;;  %v353_v55 = vpop.permute.xlu0 %352 }
 0x2ac   :  { %v360_v56 = vsel %vm358_vm2, %v2648_v53, %v353_v55  ;;  %1940 = vmatprep.mubr.msk.f32.mxu0 %vm361_vm3, %v359_v54 }
 0x2ad   :  { %1941 = vmatmul.mubr.msk.f32.vlgmr.msra.gmra.mrb[2].mxu0 %vm361_vm3, %v360_v56 }
 0x2ae   :  { %2219 = vmatpush3.bf16.msra.mxu0 %v2510_v3 }
 0x2af   :  { %2221 = vmatprep.subr.bf16.mxu0 %v2520_v6 }
 0x2b2   :  { %2223 = vmatpush3.bf16.msra.mxu0 %v2520_v6 }
 0x2b3   :  { %2233 = vmatprep.subr.bf16.mxu0 %v2586_v30 }
 0x380   :  { %v1942_v23 = vpop.f32.mrb[2].mxu0 }
 0x381   :  { %v440_v24 = vadd.f32 %v1942_v23, %v2722_v22  ;;  %v434_v25 = vpop.f32.mrb[3].mxu0 }
 0x382   :  { %v435_v27 = vadd.f32 %v434_v25, %v2722_v22 }
 0x383   :  { %v1720_v28 = vmul.f32 -1.442695, %v440_v24 }
 0x384   :  { %v1719_v29 = vmul.f32 -1.442695, %v435_v27 }
 0x385   :  { %2381 = vpow2.f32 %v1720_v28 }
 0x386   :  { %2383 = vpow2.f32 %v1719_v29 }
 0x38f   :  { %v2382_v31 = vpop.eup %2381 }
 0x390   :  { %v2384_v33 = vpop.eup %2383  ;;  %v450_v34 = vadd.f32 1.0, %v2382_v31 }
 0x391   :  { %v449_v35 = vadd.f32 1.0, %v2384_v33 }
 0x392   :  { %2385 = vrcp.f32 %v450_v34 }
 0x393   :  { %2387 = vrcp.f32 %v449_v35 }
 0x39c   :  { %v2386_v36 = vpop.eup %2385 }
 0x39d   :  { %v2388_v38 = vpop.eup %2387  ;;  %v456_v39 = vmul.f32 %v2386_v36, %v2531_v7  ;;  %v551_v61 = vsub.f32 1.0, %v2386_v36 }
 0x39e   :  { %v455_v41 = vmul.f32 %v2388_v38, %v2518_v5  ;;  %v550_v55 = vsub.f32 1.0, %v2388_v38 }
 0x39f   :  { %461 = vrot.lane.b32.xlu0 %v456_v39, %s2447_s28 }
 0x3a0   :  { %459 = vrot.lane.b32.xlu1 %v455_v41, %s2447_s28 }
 0x3a4   :  { %552 = vrot.lane.b32.xlu1 %v2518_v5, %s2446_s1  ;;  %v87_v5 = vsub.s32 2, %v2535_v9 }
 0x3a6   :  { %v2744_v48 = vrot.slane %v2541_v11, %v87_v5 }
 0x3a8   :  { %554 = vrot.lane.b32.xlu1 %v2531_v7, %s2446_s1 }
 0x411   :  { %v462_v42 = vpop.permute.xlu0 %461 }
 0x412   :  { %v460_v44 = vpop.permute.xlu1 %459  ;;  %v466_v47 = vsel %vm358_vm2, %v2648_v53, %v462_v42 }
 0x413   :  { %v465_v45 = vsel %vm358_vm2, %v2645_v51, %v460_v44 }
 0x414   :  { %1967 = vmatprep.mubr.msk.f32.mxu1 %vm361_vm3, %v465_v45 }
 0x415   :  { %1968 = vmatmul.mubr.msk.f32.vlgmr.msra.gmra.mrb[4].mxu1 %vm361_vm3, %v466_v47 }
 0x416   :  { %1985 = vmatprep.mubr.msk.f32.mxu1 %vm171_vm1, %v2546_v12  ;;  %v2750_v54 = vpop.permute.xlu1 %552 }
 0x417   :  { %v558_v57 = vmul.f32 %v2750_v54, %v550_v55 }
 0x41a   :  { %v2753_v59 = vpop.permute.xlu1 %554 }
 0x41b   :  { %v559_v2 = vmul.f32 %v2753_v59, %v551_v61 }
 0x4e8   :  { %v1969_v7 = vpop.f32.mrb[4].mxu1 }
 0x4e9   :  { %v539_v49 = vpop.f32.mrb[5].mxu1  ;;  %v545_v51 = vadd.f32 %v1969_v7, %v2744_v48 }
 0x4ea   :  { %v540_v50 = vadd.f32 %v539_v49, %v2744_v48 }
 0x4ec   :  { %2389 = vtanh.f32 %v540_v50 }
 0x4ed   :  { %2391 = vtanh.f32 %v545_v51 }
 0x4f6   :  { %v2390_v52 = vpop.eup %2389 }
 0x4f7   :  { %562 = vrot.lane.b32.xlu0 %v2390_v52, %s2446_s1  ;;  %v2392_v53 = vpop.eup %2391 }
 0x4fb   :  { %564 = vrot.lane.b32.xlu0 %v2392_v53, %s2446_s1 }
 0x569   :  { %v563_v56 = vpop.permute.xlu0 %562 }
 0x56a   :  { %v568_v58 = vmul.f32 %v2388_v38, %v563_v56 }
 0x56c   :  { %v2755_v63 = vadd.f32 %v568_v58, %v558_v57 }
 0x56d   :  { %v565_v0 = vpop.permute.xlu0 %564 }
 0x56e   :  { %v569_v4 = vmul.f32 %v2386_v36, %v565_v0  ;;  %574 = vrot.lane.b32.xlu1 %v2755_v63, %s2445_s0 }
 0x570   :  { %v2760_v10 = vadd.f32 %v569_v4, %v559_v2 }
 0x572   :  { %576 = vrot.lane.b32.xlu0 %v2760_v10, %s2445_s0 }
 0x5e0   :  { %v2764_v14 = vpop.permute.xlu1 %574 }
 0x5e1   :  { %1978 = vmatprep.mubr.msk.f32.mxu0 %vm89_vm0, %v2764_v14 }
 0x5e4   :  { %v2768_v16 = vpop.permute.xlu0 %576 }
 0x5e5   :  { %1979 = vmatmul.mubr.msk.f32.vlgmr.msra.gmra.mrb[4].mxu0 %vm89_vm0, %v2768_v16 }
 0x5e6   :  { %2235 = vmatpush3.bf16.msra.mxu0 %v2586_v30 }
 0x5e7   :  { %2237 = vmatprep.subr.bf16.mxu0 %v2591_v32 }
 0x5ea   :  { %2239 = vmatpush3.bf16.msra.mxu0 %v2591_v32 }
 0x5eb   :  { %2241 = vmatprep.subr.bf16.mxu0 %v2602_v37 }
 0x5ee   :  { %2243 = vmatpush3.bf16.msra.mxu0 %v2602_v37 }
 0x5ef   :  { %2245 = vmatprep.subr.bf16.mxu0 %v2612_v40 }
 0x5f2   :  { %2247 = vmatpush3.bf16.msra.mxu0 %v2612_v40 }
 0x5f3   :  { %2249 = vmatprep.subr.bf16.mxu0 %v2622_v43 }
 0x5f6   :  { %2251 = vmatpush3.bf16.msra.mxu0 %v2622_v43 }
 0x5f7   :  { %2253 = vmatprep.subr.bf16.mxu0 %v2633_v46 }
 0x5fa   :  { %2255 = vmatpush3.bf16.msra.mxu0 %v2633_v46 }
 0x5fb   :  { %2281 = vmatprep.subr.bf16.mxu0 %v2510_v3 }
 0x6b8   :  { %v1980_v17 = vpop.f32.mrb[4].mxu0 }
 0x6b9   :  { %v654_v19 = vadd.f32 %v1980_v17, %v2551_v13  ;;  %v648_v23 = vpop.f32.mrb[5].mxu0 }
 0x6ba   :  { %v649_v24 = vadd.f32 %v648_v23, %v2551_v13 }
 0x6bc   :  { %v2371_v25 = vpack.i.bf16 %v654_v19, %v649_v24  ;;  %v2224_v27 = vpack.c.bf16 %v654_v19, %v649_v24 }
 0x6be   :  { %2372 = vrot.lane.b32.xlu1 %v2371_v25, %s2445_s0  ;;  %2225 = vmatprep.subr.bf16.mxu1 %v2224_v27 }
 0x6bf   :  { %2227 = vmatpush3.bf16.msra.mxu1 %v2224_v27 }
 0x6c2   :  { %1986 = vmatmul.mubr.msk.f32.vlgmr.msra.gmra.mrb[6].mxu1 %vm171_vm1, %v2559_v20 }
 0x6c3   :  { %1992 = vmatprep.mubr.msk.f32.mxu1 %vm171_vm1, %v2564_v21 }
 0x730   :  { %v2373_v28 = vpop.permute.xlu1 %2372 }
 0x731   :  { %v2375_v29 = vunpack.i.h.bf16 %v2373_v28  ;;  %v2374_v31 = vunpack.i.l.bf16 %v2373_v28 }
 0x733   :  { %v2228_v33 = vpack.c.bf16 %v2375_v29, %v2374_v31 }
 0x735   :  { %2229 = vmatprep.subr.bf16.mxu1 %v2228_v33 }
 0x736   :  { %2231 = vmatpush3.bf16.msra.mxu1 %v2228_v33 }
 0x737   :  { %2257 = vmatprep.subr.bf16.mxu1 %v2669_v60 }
 0x739   :  { %1993 = vmatmul.mubr.msk.f32.vlgmr.msra.gmra.mrb[8].mxu1 %vm171_vm1, %v2573_v26 }
 0x73a   :  { %2259 = vmatpush3.bf16.msra.mxu1 %v2669_v60 }
 0x73b   :  { %2261 = vmatprep.subr.bf16.mxu1 %v2674_v62 }
 0x73e   :  { %2263 = vmatpush3.bf16.msra.mxu1 %v2674_v62 }
 0x73f   :  { %2265 = vmatprep.subr.bf16.mxu1 %v2685_v1 }
 0x742   :  { %2267 = vmatpush3.bf16.msra.mxu1 %v2685_v1 }
 0x743   :  { %2269 = vmatprep.subr.bf16.mxu1 %v2695_v8 }
 0x746   :  { %2271 = vmatpush3.bf16.msra.mxu1 %v2695_v8 }
 0x747   :  { %2273 = vmatprep.subr.bf16.mxu1 %v2705_v15 }
 0x74a   :  { %2275 = vmatpush3.bf16.msra.mxu1 %v2705_v15 }
 0x74b   :  { %2277 = vmatprep.subr.bf16.mxu1 %v2715_v18 }
 0x74e   :  { %2279 = vmatpush3.bf16.msra.mxu1 %v2715_v18 }
 0x795   :  { %v1987_v34 = vpop.f32.mrb[6].mxu1 }
 0x796   :  { %v723_v35 = vpop.f32.mrb[7].mxu1 }
 0x80c   :  { %v1994_v36 = vpop.f32.mrb[8].mxu1 }
 0x80d   :  { %819 = vrot.lane.b32.xlu1 %v1994_v36, %s2446_s1  ;;  %v806_v38 = vpop.f32.mrb[9].mxu1 }
 0x80e   :  { %817 = vrot.lane.b32.xlu0 %v806_v38, %s2446_s1 }
 0x811   :  { %825 = vrot.lane.b32.xlu1 %v2760_v10, %s2446_s1 }
 0x812   :  { %823 = vrot.lane.b32.xlu0 %v2755_v63, %s2446_s1 }
 0x87f   :  { %v820_v39 = vpop.permute.xlu1 %819 }
 0x880   :  { %v818_v41 = vpop.permute.xlu0 %817  ;;  %v830_v47 = vsel %vm89_vm0, %v1987_v34, %v820_v39 }
 0x881   :  { %v829_v44 = vsel %vm89_vm0, %v723_v35, %v818_v41 }
 0x883   :  { %v826_v42 = vpop.permute.xlu1 %825 }
 0x884   :  { %v824_v45 = vpop.permute.xlu0 %823  ;;  %v832_v7 = vsel %vm358_vm2, %v830_v47, %v826_v42 }
 0x885   :  { %v831_v5 = vsel %vm358_vm2, %v829_v44, %v824_v45 }
 0x886   :  { %2019 = vmatprep.mubr.msk.f32.mxu0 %vm361_vm3, %v831_v5 }
 0x887   :  { %2020 = vmatmul.mubr.msk.f32.vlgmr.msra.gmra.mrb[6].mxu0 %vm361_vm3, %v832_v7 }
 0x888   :  { %2283 = vmatpush3.bf16.msra.mxu0 %v2510_v3 }
 0x889   :  { %2285 = vmatprep.subr.bf16.mxu0 %v2520_v6 }
 0x88c   :  { %2287 = vmatpush3.bf16.msra.mxu0 %v2520_v6 }
 0x88d   :  { %2297 = vmatprep.subr.bf16.mxu0 %v2586_v30 }
 0x95a   :  { %v2021_v49 = vpop.f32.mrb[6].mxu0 }
 0x95b   :  { %v911_v50 = vadd.f32 %v2021_v49, %v2722_v22  ;;  %v905_v51 = vpop.f32.mrb[7].mxu0 }
 0x95c   :  { %v906_v52 = vadd.f32 %v905_v51, %v2722_v22 }
 0x95d   :  { %v1732_v53 = vmul.f32 -1.442695, %v911_v50 }
 0x95e   :  { %v1731_v55 = vmul.f32 -1.442695, %v906_v52 }
 0x95f   :  { %2393 = vpow2.f32 %v1732_v53 }
 0x960   :  { %2395 = vpow2.f32 %v1731_v55 }
 0x969   :  { %v2394_v56 = vpop.eup %2393 }
 0x96a   :  { %v2396_v57 = vpop.eup %2395  ;;  %v921_v58 = vadd.f32 1.0, %v2394_v56 }
 0x96b   :  { %v920_v3 = vadd.f32 1.0, %v2396_v57 }
 0x96c   :  { %2397 = vrcp.f32 %v921_v58 }
 0x96d   :  { %2399 = vrcp.f32 %v920_v3 }
 0x976   :  { %v2398_v61 = vpop.eup %2397 }
 0x977   :  { %v2400_v6 = vpop.eup %2399  ;;  %v929_v0 = vmul.f32 %v2398_v61, %v2768_v16  ;;  %v1024_v29 = vsub.f32 1.0, %v2398_v61 }
 0x978   :  { %v928_v2 = vmul.f32 %v2400_v6, %v2764_v14  ;;  %v1023_v31 = vsub.f32 1.0, %v2400_v6 }
 0x979   :  { %934 = vrot.lane.b32.xlu1 %v929_v0, %s2447_s28  ;;  %v1026_v34 = vmul.f32 %v1024_v29, %v2760_v10 }
 0x97a   :  { %932 = vrot.lane.b32.xlu0 %v928_v2, %s2447_s28  ;;  %v1025_v36 = vmul.f32 %v1023_v31, %v2755_v63  ;;  %v70_v31 = vld [vmem:[%s2974_s6 + $0x18] sm:$0xff] }
 0x9eb   :  { %v935_v4 = vpop.permute.xlu1 %934 }
 0x9ec   :  { %v933_v17 = vpop.permute.xlu0 %932  ;;  %v939_v23 = vsel %vm358_vm2, %v830_v47, %v935_v4 }
 0x9ed   :  { %v938_v19 = vsel %vm358_vm2, %v829_v44, %v933_v17 }
 0x9ee   :  { %2046 = vmatprep.mubr.msk.f32.mxu1 %vm361_vm3, %v938_v19 }
 0x9ef   :  { %2047 = vmatmul.mubr.msk.f32.vlgmr.msra.gmra.mrb[10].mxu1 %vm361_vm3, %v939_v23 }
 0x9f0   :  { %2064 = vmatprep.mubr.msk.f32.mxu1 %vm171_vm1, %v2546_v12 }
 0xac2   :  { %v2048_v16 = vpop.f32.mrb[10].mxu1 }
 0xac3   :  { %v1018_v14 = vadd.f32 %v2048_v16, %v2744_v48  ;;  %v1012_v24 = vpop.f32.mrb[11].mxu1 }
 0xac4   :  { %v1013_v25 = vadd.f32 %v1012_v24, %v2744_v48 }
 0xac5   :  { %2401 = vtanh.f32 %v1018_v14 }
 0xac6   :  { %2403 = vtanh.f32 %v1013_v25  ;;  %v67_v25 = vld [vmem:[%s2974_s6] sm:$0xff] }
 0xacf   :  { %v2402_v27 = vpop.eup %2401 }
 0xad0   :  { %v2404_v28 = vpop.eup %2403  ;;  %1031 = vrot.lane.b32.xlu1 %v2402_v27, %s2446_s1  ;;  %v68_v27 = vld [vmem:[%s2974_s6 + $0x8] sm:$0xff] }
 0xad1   :  { %1029 = vrot.lane.b32.xlu0 %v2404_v28, %s2446_s1  ;;  %v69_v28 = vld [vmem:[%s2974_s6 + $0x10] sm:$0xff]  ;;  %v2344_v29 = vpack.c.bf16 %v68_v27, %v67_v25 }
 0xb42   :  { %v1032_v33 = vpop.permute.xlu1 %1031 }
 0xb43   :  { %v1036_v12 = vmul.f32 %v2398_v61, %v1032_v33  ;;  %v1030_v35 = vpop.permute.xlu0 %1029 }
 0xb44   :  { %v1035_v38 = vmul.f32 %v2400_v6, %v1030_v35 }
 0xb45   :  { %v2839_v39 = vadd.f32 %v1036_v12, %v1026_v34  ;;  %v71_v12 = vld [vmem:[%s2974_s6 + $0x20] sm:$0xf] }
 0xb46   :  { %v2841_v41 = vadd.f32 %v1035_v38, %v1025_v36 }
 0xb47   :  { %1043 = vrot.lane.b32.xlu1 %v2839_v39, %s2445_s0 }
 0xb48   :  { %1041 = vrot.lane.b32.xlu0 %v2841_v41, %s2445_s0 }
 0xbb9   :  { %v2849_v44 = vpop.permute.xlu1 %1043 }
 0xbba   :  { %v2847_v42 = vpop.permute.xlu0 %1041 }
 0xbbb   :  { %2057 = vmatprep.mubr.msk.f32.mxu0 %vm89_vm0, %v2847_v42 }
 0xbbc   :  { %2058 = vmatmul.mubr.msk.f32.vlgmr.msra.gmra.mrb[8].mxu0 %vm89_vm0, %v2849_v44 }
 0xbbd   :  { %2299 = vmatpush3.bf16.msra.mxu0 %v2586_v30 }
 0xbbe   :  { %2301 = vmatprep.subr.bf16.mxu0 %v2591_v32 }
 0xbc1   :  { %2303 = vmatpush3.bf16.msra.mxu0 %v2591_v32 }
 0xbc2   :  { %2305 = vmatprep.subr.bf16.mxu0 %v2602_v37 }
 0xbc5   :  { %2307 = vmatpush3.bf16.msra.mxu0 %v2602_v37 }
 0xbc6   :  { %2309 = vmatprep.subr.bf16.mxu0 %v2612_v40 }
 0xbc9   :  { %2311 = vmatpush3.bf16.msra.mxu0 %v2612_v40 }
 0xbca   :  { %2313 = vmatprep.subr.bf16.mxu0 %v2622_v43 }
 0xbcd   :  { %2315 = vmatpush3.bf16.msra.mxu0 %v2622_v43 }
 0xbce   :  { %2317 = vmatprep.subr.bf16.mxu0 %v2633_v46 }
 0xbd1   :  { %2319 = vmatpush3.bf16.msra.mxu0 %v2633_v46 }
 0xbd2   :  { %2345 = vmatprep.subr.bf16.mxu0 %v2344_v29 }
 0xc8f   :  { %v2059_v30 = vpop.f32.mrb[8].mxu0 }
 0xc90   :  { %v1121_v63 = vadd.f32 %v2059_v30, %v2551_v13  ;;  %v1115_v32 = vpop.f32.mrb[9].mxu0 }
 0xc91   :  { %v1116_v10 = vadd.f32 %v1115_v32, %v2551_v13 }
 0xc93   :  { %v2376_v45 = vpack.i.bf16 %v1121_v63, %v1116_v10  ;;  %v2288_v37 = vpack.c.bf16 %v1121_v63, %v1116_v10 }
 0xc95   :  { %2377 = vrot.lane.b32.xlu0 %v2376_v45, %s2445_s0  ;;  %2289 = vmatprep.subr.bf16.mxu1 %v2288_v37 }
 0xc96   :  { %2291 = vmatpush3.bf16.msra.mxu1 %v2288_v37 }
 0xc99   :  { %2065 = vmatmul.mubr.msk.f32.vlgmr.msra.gmra.mrb[12].mxu1 %vm171_vm1, %v2559_v20 }
 0xc9a   :  { %2071 = vmatprep.mubr.msk.f32.mxu1 %vm171_vm1, %v2564_v21 }
 0xd07   :  { %v2378_v40 = vpop.permute.xlu0 %2377 }
 0xd08   :  { %v2380_v43 = vunpack.i.h.bf16 %v2378_v40  ;;  %v2379_v46 = vunpack.i.l.bf16 %v2378_v40 }
 0xd0a   :  { %v2292_v47 = vpack.c.bf16 %v2380_v43, %v2379_v46  ;;  %v73_v46 = vld [vmem:[%s2975_s7 + $0x8] sm:$0xff] }
 0xd0c   :  { %2293 = vmatprep.subr.bf16.mxu1 %v2292_v47 }
 0xd0d   :  { %2295 = vmatpush3.bf16.msra.mxu1 %v2292_v47  ;;  %v74_v47 = vld [vmem:[%s2975_s7 + $0x10] sm:$0xff] }
 0xd0e   :  { %2321 = vmatprep.subr.bf16.mxu1 %v2669_v60 }
 0xd10   :  { %2072 = vmatmul.mubr.msk.f32.vlgmr.msra.gmra.mrb[14].mxu1 %vm171_vm1, %v2573_v26 }
 0xd11   :  { %2323 = vmatpush3.bf16.msra.mxu1 %v2669_v60 }
 0xd12   :  { %2325 = vmatprep.subr.bf16.mxu1 %v2674_v62 }
 0xd15   :  { %2327 = vmatpush3.bf16.msra.mxu1 %v2674_v62 }
 0xd16   :  { %2329 = vmatprep.subr.bf16.mxu1 %v2685_v1 }
 0xd19   :  { %2331 = vmatpush3.bf16.msra.mxu1 %v2685_v1 }
 0xd1a   :  { %2333 = vmatprep.subr.bf16.mxu1 %v2695_v8 }
 0xd1d   :  { %2335 = vmatpush3.bf16.msra.mxu1 %v2695_v8 }
 0xd1e   :  { %2337 = vmatprep.subr.bf16.mxu1 %v2705_v15 }
 0xd21   :  { %2339 = vmatpush3.bf16.msra.mxu1 %v2705_v15 }
 0xd22   :  { %2341 = vmatprep.subr.bf16.mxu1 %v2715_v18 }
 0xd25   :  { %2343 = vmatpush3.bf16.msra.mxu1 %v2715_v18 }
 0xd6c   :  { %v2066_v13 = vpop.f32.mrb[12].mxu1 }
 0xd6d   :  { %v1190_v20 = vpop.f32.mrb[13].mxu1 }
 0xde3   :  { %v2073_v21 = vpop.f32.mrb[14].mxu1 }
 0xde4   :  { %1286 = vrot.lane.b32.xlu0 %v2073_v21, %s2446_s1  ;;  %v1273_v26 = vpop.f32.mrb[15].mxu1 }
 0xde5   :  { %1284 = vrot.lane.b32.xlu1 %v1273_v26, %s2446_s1 }
 0xde8   :  { %1292 = vrot.lane.b32.xlu0 %v2839_v39, %s2446_s1 }
 0xde9   :  { %1290 = vrot.lane.b32.xlu1 %v2841_v41, %s2446_s1 }
 0xe56   :  { %v1287_v60 = vpop.permute.xlu0 %1286 }
 0xe57   :  { %v1285_v62 = vpop.permute.xlu1 %1284  ;;  %v1297_v18 = vsel %vm89_vm0, %v2066_v13, %v1287_v60 }
 0xe58   :  { %v1296_v8 = vsel %vm89_vm0, %v1190_v20, %v1285_v62  ;;  %v1518_v20 = vsub.s32 3, %v2535_v9 }
 0xe5a   :  { %v1293_v1 = vpop.permute.xlu0 %1292  ;;  %v1519_v21 = vrot.slane %v2541_v11, %v1518_v20 }
 0xe5b   :  { %v1291_v15 = vpop.permute.xlu1 %1290  ;;  %v1299_v7 = vsel %vm358_vm2, %v1297_v18, %v1293_v1 }
 0xe5c   :  { %v1298_v5 = vsel %vm358_vm2, %v1296_v8, %v1291_v15 }
 0xe5d   :  { %2098 = vmatprep.mubr.msk.f32.mxu0 %vm361_vm3, %v1298_v5 }
 0xe5e   :  { %2099 = vmatmul.mubr.msk.f32.vlgmr.msra.gmra.mrb[10].mxu0 %vm361_vm3, %v1299_v7 }
 0xe5f   :  { %2347 = vmatpush3.bf16.msra.mxu0 %v2344_v29 }
 0xf31   :  { %v2100_v49 = vpop.f32.mrb[10].mxu0 }
 0xf32   :  { %v1378_v50 = vadd.f32 %v2100_v49, %v2722_v22  ;;  %v1372_v51 = vpop.f32.mrb[11].mxu0 }
 0xf33   :  { %v1373_v52 = vadd.f32 %v1372_v51, %v2722_v22 }
 0xf34   :  { %v1744_v53 = vmul.f32 -1.442695, %v1378_v50 }
 0xf35   :  { %v1743_v55 = vmul.f32 -1.442695, %v1373_v52 }
 0xf36   :  { %2405 = vpow2.f32 %v1744_v53 }
 0xf37   :  { %2407 = vpow2.f32 %v1743_v55 }
 0xf40   :  { %v2406_v56 = vpop.eup %2405 }
 0xf41   :  { %v2408_v57 = vpop.eup %2407  ;;  %v1388_v58 = vadd.f32 1.0, %v2406_v56 }
 0xf42   :  { %v1387_v3 = vadd.f32 1.0, %v2408_v57 }
 0xf43   :  { %2409 = vrcp.f32 %v1388_v58 }
 0xf44   :  { %2411 = vrcp.f32 %v1387_v3 }
 0xf4d   :  { %v2410_v61 = vpop.eup %2409 }
 0xf4e   :  { %v2412_v6 = vpop.eup %2411  ;;  %v1396_v0 = vmul.f32 %v2410_v61, %v2849_v44  ;;  %v1491_v35 = vsub.f32 1.0, %v2410_v61 }
 0xf4f   :  { %v1395_v2 = vmul.f32 %v2412_v6, %v2847_v42  ;;  %v1490_v36 = vsub.f32 1.0, %v2412_v6 }
 0xf50   :  { %1401 = vrot.lane.b32.xlu0 %v1396_v0, %s2447_s28  ;;  %v1493_v42 = vmul.f32 %v1491_v35, %v2839_v39 }
 0xf51   :  { %1399 = vrot.lane.b32.xlu1 %v1395_v2, %s2447_s28  ;;  %v1492_v63 = vmul.f32 %v1490_v36, %v2841_v41  ;;  %v72_v41 = vld [vmem:[%s2975_s7] sm:$0xff] }
 0xf52   :  { %v2352_v13 = vpack.c.bf16 %v73_v46, %v72_v41 }
 0xf54   :  { %2353 = vmatprep.subr.bf16.mxu1 %v2352_v13 }
 0xfc2   :  { %v1402_v22 = vpop.permute.xlu0 %1401 }
 0xfc3   :  { %v1400_v4 = vpop.permute.xlu1 %1399  ;;  %v1406_v19 = vsel %vm358_vm2, %v1297_v18, %v1402_v22  ;;  %v1610_v18 = vsub.s32 4, %v2535_v9 }
 0xfc4   :  { %v1405_v17 = vsel %vm358_vm2, %v1296_v8, %v1400_v4 }
 0xfc5   :  { %2125 = vmatprep.mubr.msk.f32.mxu1 %vm361_vm3, %v1405_v17  ;;  %v1611_v5 = vrot.slane %v2541_v11, %v1610_v18 }
 0xfc6   :  { %2126 = vmatmul.mubr.msk.f32.vlgmr.msra.gmra.mrb[16].mxu1 %vm361_vm3, %v1406_v19 }
 0xfc7   :  { %2355 = vmatpush3.bf16.msra.mxu1 %v2352_v13 }
0x1099   :  { %v2127_v23 = vpop.f32.mrb[16].mxu1 }
0x109a   :  { %v1485_v16 = vadd.f32 %v2127_v23, %v2744_v48  ;;  %v1479_v14 = vpop.f32.mrb[17].mxu1 }
0x109b   :  { %v1480_v24 = vadd.f32 %v1479_v14, %v2744_v48  ;;  %v2348_v48 = vpack.c.bf16 %v70_v31, %v69_v28 }
0x109c   :  { %2413 = vtanh.f32 %v1485_v16 }
0x109d   :  { %2415 = vtanh.f32 %v1480_v24  ;;  %2349 = vmatprep.subr.bf16.mxu0 %v2348_v48 }
0x109e   :  { %2351 = vmatpush3.bf16.msra.mxu0 %v2348_v48 }
0x109f   :  { %2136 = vmatprep.subr.msk.mxu0 %vm1527_vm4, %v71_v12 }
0x10a2   :  { %2137 = vmatpush3.msk.msra.mxu0 %vm1527_vm4, %v71_v12 }
0x10a6   :  { %v2414_v33 = vpop.eup %2413 }
0x10a7   :  { %v2416_v34 = vpop.eup %2415  ;;  %1498 = vrot.lane.b32.xlu0 %v2414_v33, %s2446_s1 }
0x10a8   :  { %1496 = vrot.lane.b32.xlu1 %v2416_v34, %s2446_s1 }
0x1119   :  { %v1499_v38 = vpop.permute.xlu0 %1498 }
0x111a   :  { %v1503_v44 = vmul.f32 %v2410_v61, %v1499_v38  ;;  %v1497_v30 = vpop.permute.xlu1 %1496 }
0x111b   :  { %v1502_v32 = vmul.f32 %v2412_v6, %v1497_v30 }
0x111c   :  { %v1505_v10 = vadd.f32 %v1503_v44, %v1493_v42 }
0x111d   :  { %v1504_v45 = vadd.f32 %v1502_v32, %v1492_v63 }
0x111e   :  { %1510 = vrot.lane.b32.xlu0 %v1505_v10, %s2445_s0 }
0x111f   :  { %1508 = vrot.lane.b32.xlu1 %v1504_v45, %s2445_s0 }
0x1190   :  { %v1511_v37 = vpop.permute.xlu0 %1510 }
0x1191   :  { %v1509_v40 = vpop.permute.xlu1 %1508  ;;  %v1515_v39 = vsel %vm89_vm0, %v1511_v37, %v2753_v59 }
0x1192   :  { %v1514_v43 = vsel %vm89_vm0, %v1509_v40, %v2750_v54  ;;  %v75_v54 = vld [vmem:[%s2975_s7 + $0x18] sm:$0xff]  ;;  %s2448_s7 = smov [#allocation2]  }
0x1193   :  { %2138 = vmatprep.mubr.msk.f32.mxu0 %vm1520_vm5, %v1514_v43  ;;  %v2356_v59 = vpack.c.bf16 %v75_v54, %v74_v47  ;;  %s1700_s3 = sshll.u32 %s2448_s7, 4  ;;  %s1701_s3 = int_to_ptr.vmem [resolvable:$true] %s1700_s3 }
0x1194   :  { %2139 = vmatmul.mubr.msk.f32.vlgmr.msra.gmra.mrb[12].mxu0 %vm1520_vm5, %v1515_v39  ;;  %s2421_s19 = scalar_lea.vmem %s1701_s3, 256  ;;  %p2426_p1 = scmp.lt.s32.totalorder %s1701_s3, %s1701_s3 }
0x1195   :  { %2357 = vmatprep.subr.bf16.mxu1 %v2356_v59  ;;  %p2422_p0 = scmp.ne.s32.totalorder %s1701_s3, %s2421_s19  ;;  %p2427_p2 = scmp.lt.s32.totalorder %s2421_s19, %s2421_s19 }
0x1196   :  { %2359 = vmatpush3.bf16.msra.mxu1 %v2356_v59 }
0x1197   :  { %p2428_p3 = por %p2427_p2, %p2426_p1 }
0x1199   :  { %p2429_p4 = pnand %p2428_p3, %p2422_p0 }
0x1267   :  { %v2140_v26 = vpop.f32.mrb[12].mxu0 }
0x1268   :  { %v1603_v60 = vadd.f32 %v2140_v26, %v1519_v21  ;;  %v1597_v62 = vpop.f32.mrb[13].mxu0 }
0x1269   :  { %v1598_v1 = vadd.f32 %v1597_v62, %v1519_v21 }
0x126b   :  { %2417 = vtanh.f32 %v1598_v1 }
0x126c   :  { %2419 = vtanh.f32 %v1603_v60 }
0x1275   :  { %v2418_v8 = vpop.eup %2417 }
0x1276   :  { %v2420_v15 = vpop.eup %2419  ;;  %2149 = vmatprep.mubr.msk.f32.mxu1 %vm89_vm0, %v2418_v8 }
0x1277   :  { %2150 = vmatmul.mubr.msk.f32.vlgmr.msra.gmra.mrb[18].mxu1 %vm89_vm0, %v2420_v15 }
0x134a   :  { %v2151_v7 = vpop.f32.mrb[18].mxu1 }
0x134b   :  { %v1690_v49 = vadd.f32 %v2151_v7, %v1611_v5  ;;  %v1684_v50 = vpop.f32.mrb[19].mxu1 }
0x134c   :  { %v1685_v51 = vadd.f32 %v1684_v50, %v1611_v5 }
0x134d   :  { %1694 = vst.msk [vmem:[#allocation2 + $0x8] sm:$0xff] %vm89_vm0, %v1690_v49 }
0x134e   :  { %1693 = vst.msk [vmem:[#allocation2] sm:$0xff] %vm89_vm0, %v1685_v51 }
0x134f   :  { %2432 = shalt.err (!%p2429_p4)
}
0x1350   :  { %s2433_s22 = scalar_lea.hbm %s2977_s9, 256 }
0x1351   :  { %p2434_p5 = scmp.ne.s32.totalorder %s2977_s9, %s2433_s22  ;;  %p2437_p6 = scmp.lt.u32.totalorder %s2433_s22, %s2977_s9 }
0x1353   :  { %p2439_p7 = pnand %p2437_p6, %p2434_p5 }
0x1355   :  { %2442 = shalt.err (!%p2439_p7)
}
0x1356   :  { %s2449_s26 = smov 128   ;;  %s2450_s27 = smov 8  }
0x1357   :  { %1706 = dma.vmem_to_hbm [thread:$0]  %s1701_s3, 256, %s2977_s9, [#allocation3], %s2449_s26, %s2449_s26, %s2450_s27  }
0x1358   :  { %2443 = dma.done.wait [#allocation3], 256  }
0x1359   :  { %2444 = vsyncadd [#allocation3], 4294967040 }
0x135a   :  { %1710 = vsyncpa [#allocation3], 1 }

</bundles_post_ra>
